<compile_context>
chip_gen: v6e
topology: v6e:2x2x1
jax: 0.10.0
libtpu: 0.0.40
codegen_flags: <defaults>
</compile_context>

<pallas_src>
import jax
import jax.numpy as jnp
from jax.experimental import pallas as pl
from jax.experimental.pallas import tpu as pltpu


def _round_up(a, b):
    return ((a + b - 1) // b) * b


def _cdiv(a, b):
    return (a + b - 1) // b


def _matmul_bias_kernel(p_ref, w_ref, b_ref, o_ref):
    # p_ref: (tile_m, K_pad)  w_ref: (K_pad, tile_n)  b_ref: (1, tile_n)
    # o_ref: (tile_m, tile_n)
    acc = jnp.dot(p_ref[...], w_ref[...], preferred_element_type=jnp.float32)
    o_ref[...] = (acc + b_ref[...]).astype(o_ref.dtype)


def _im2col(x_pad, KH, KW, sh, sw, OH, OW):
    """x_pad: (N, H_pad, W_pad, Cin) -> (N*OH*OW, KH*KW*Cin), column order (KH, KW, Cin)."""
    N, H_pad, W_pad, Cin = x_pad.shape
    if sh == KH and sw == KW:
        # Patch-embedding fast path: non-overlapping patches -> pure reshape/transpose.
        x_c = x_pad[:, :OH * KH, :OW * KW, :]
        x_r = x_c.reshape(N, OH, KH, OW, KW, Cin)
        x_t = jnp.transpose(x_r, (0, 1, 3, 2, 4, 5))            # (N, OH, OW, KH, KW, Cin)
        return x_t.reshape(N * OH * OW, KH * KW * Cin)
    # General (possibly overlapping stride) path: one strided slice per tap.
    # TODO(synk): for large overlapping convs, fuse im2col into the kernel
    # (x_pad in HBM via memory_space=pl.ANY + per-tap DMAs) to avoid the KH*KW
    # duplication of HBM traffic; not needed for the patch-embedding use case.
    cols = []
    for kh in range(KH):
        for kw in range(KW):
            sl = jax.lax.slice(
                x_pad,
                (0, kh, kw, 0),
                (N, kh + (OH - 1) * sh + 1, kw + (OW - 1) * sw + 1, Cin),
                (1, sh, sw, 1),
            )  # (N, OH, OW, Cin)
            cols.append(sl)
    patches = jnp.stack(cols, axis=3)                            # (N, OH, OW, KH*KW, Cin)
    return patches.reshape(N * OH * OW, KH * KW * Cin)


def _pick_tiles(M, K_pad, Cout_pad, cbytes, obytes, tile_m, tile_n, vmem_budget):
    """Pick (tile_m, tile_n) honoring dtype sublane packing + a VMEM budget."""
    min_m = {4: 8, 2: 16, 1: 32}.get(cbytes, 8)

    # Keep the weight fully resident (full padded Cout width) when it is small.
    if K_pad * Cout_pad * cbytes <= (8 << 20):
        tile_n = Cout_pad
    else:
        tile_n = min(_round_up(tile_n, 128), Cout_pad)

    tile_m = min(tile_m, _round_up(M, min_m))
    tile_m = _round_up(tile_m, min_m)

    def vmem_bytes(tm, tn):
        # double-buffered patch/weight/bias/output blocks
        return 2 * (tm * K_pad * cbytes + K_pad * tn * cbytes + tn * 4 + tm * tn * obytes)

    while vmem_bytes(tile_m, tile_n) > vmem_budget and tile_m > min_m:
        tile_m = max(min_m, _round_up(tile_m // 2, min_m))
    while vmem_bytes(tile_m, tile_n) > vmem_budget and tile_n > 128:
        tile_n = max(128, _round_up(tile_n // 2, 128))
    # TODO(synk): if a single (min_m, 128) block still exceeds the budget (huge K),
    # add a K grid axis ("arbitrary") with an f32 VMEM accumulator.

    # Megacore (v7x has 2 TensorCores): make sure there are >=2 blocks to shard
    # along a parallel axis when the problem allows it.
    if _cdiv(M, tile_m) == 1 and Cout_pad // max(tile_n, 1) <= 1 and M > 2 * min_m:
        tile_m = _round_up(_cdiv(M, 2), min_m)

    return tile_m, tile_n, vmem_bytes(tile_m, tile_n)


def conv_embedding(x_nchw, w_oihw, bias, *, stride, padding,
                   compute_dtype=None, tile_m=512, tile_n=256):
    """Conv2d(in_channels, out_channels, kernel_size, stride, padding, bias=True).

    x_nchw: (N, Cin, H, W)   w_oihw: (Cout, Cin, KH, KW)   bias: (Cout,)
    Returns (N, Cout, OH, OW), matching PyTorch semantics.
    compute_dtype: dtype of the matmul operands (e.g. jnp.bfloat16 on v6e/v7x);
                   accumulation is always f32, output keeps the input dtype.
    """
    sh, sw = (stride, stride) if isinstance(stride, int) else stride
    ph, pw = (padding, padding) if isinstance(padding, int) else padding

    N, Cin, H, W = x_nchw.shape
    Cout, _, KH, KW = w_oihw.shape
    OH = (H + 2 * ph - KH) // sh + 1
    OW = (W + 2 * pw - KW) // sw + 1

    out_dtype = x_nchw.dtype
    if compute_dtype is None:
        compute_dtype = x_nchw.dtype
    cbytes = jnp.dtype(compute_dtype).itemsize
    obytes = jnp.dtype(out_dtype).itemsize

    # ---- layout glue (plain JAX). Cast FIRST so im2col/pad move compute-width data.
    x_c = x_nchw.astype(compute_dtype)
    w_c = w_oihw.astype(compute_dtype)

    x_nhwc = jnp.transpose(x_c, (0, 2, 3, 1))                    # (N, H, W, Cin)
    x_pad = jnp.pad(x_nhwc, ((0, 0), (ph, ph), (pw, pw), (0, 0)))
    patches = _im2col(x_pad, KH, KW, sh, sw, OH, OW)             # (M, K)
    w2d = jnp.transpose(w_c, (2, 3, 1, 0)).reshape(KH * KW * Cin, Cout)  # (K, Cout)
    b2d = bias.reshape(1, Cout).astype(jnp.float32)

    M, K = patches.shape

    # Pad K (contraction / lane axis) to a multiple of 128 so the MXU stays lane-aligned.
    K_pad = _round_up(K, 128)
    if K_pad != K:
        patches = jnp.pad(patches, ((0, 0), (0, K_pad - K)))
        w2d = jnp.pad(w2d, ((0, K_pad - K), (0, 0)))

    # Pad Cout to a lane-dense multiple of 128 (weight/bias only — tiny arrays).
    Cout_pad = _round_up(Cout, 128)
    if Cout_pad != Cout:
        w2d = jnp.pad(w2d, ((0, 0), (0, Cout_pad - Cout)))
        b2d = jnp.pad(b2d, ((0, 0), (0, Cout_pad - Cout)))

    # Tile selection with an explicit VMEM budget (safe on v7x's 64 MiB part).
    VMEM_BUDGET = 32 << 20
    tile_m, tile_n, vmem_est = _pick_tiles(
        M, K_pad, Cout_pad, cbytes, obytes, tile_m, tile_n, VMEM_BUDGET)

    grid = (_cdiv(M, tile_m), _cdiv(Cout_pad, tile_n))
    # NOTE: no explicit pad of `patches` along M — the last (ragged) M block is
    # handled by Pallas (OOB reads are row-local, OOB writes dropped).

    vmem_limit = int(min(max(1.5 * vmem_est, 16 << 20), 48 << 20))
    cost = pl.CostEstimate(
        flops=2 * M * K_pad * Cout_pad,
        transcendentals=0,
        bytes_accessed=(M * K_pad * cbytes + K_pad * Cout_pad * cbytes
                        + Cout_pad * 4 + M * Cout_pad * obytes),
    )

    out2d = pl.pallas_call(
        _matmul_bias_kernel,
        out_shape=jax.ShapeDtypeStruct((M, Cout_pad), out_dtype),
        grid_spec=pltpu.PrefetchScalarGridSpec(
            num_scalar_prefetch=0,
            grid=grid,
            in_specs=[
                pl.BlockSpec((tile_m, K_pad), lambda i, j: (i, 0)),  # im2col patches
                pl.BlockSpec((K_pad, tile_n), lambda i, j: (0, j)),  # weight (resident when grid_n==1)
                pl.BlockSpec((1, tile_n), lambda i, j: (0, j)),      # bias   (resident when grid_n==1)
            ],
            out_specs=pl.BlockSpec((tile_m, tile_n), lambda i, j: (i, j)),
        ),
        compiler_params=pltpu.CompilerParams(
            dimension_semantics=("parallel", "parallel"),
            vmem_limit_bytes=vmem_limit,
        ),
        cost_estimate=cost,
    )(patches, w2d, b2d)

    out = out2d[:, :Cout].reshape(N, OH, OW, Cout)                # drop Cout padding
    # TODO(synk): if the consumer takes NHWC / (N, OH*OW, Cout) tokens (typical ViT
    # patch embedding), return `out` directly and skip this NCHW transpose pass.
    return jnp.transpose(out, (0, 3, 1, 2))                       # back to NCHW


if __name__ == "__main__":
    key = jax.random.PRNGKey(0)

    # --- Case 1: patch-embedding shapes (stride == kernel, no padding) ---
    N, Cin, H, W = 2, 4, 16, 16
    Cout, K, S, P = 32, 4, 4, 0

    kx, kw, kb = jax.random.split(key, 3)
    x = jax.random.normal(kx, (N, Cin, H, W), jnp.float32)
    fan_in = Cin * K * K
    bound = 1.0 / (fan_in ** 0.5)
    w = jax.random.uniform(kw, (Cout, Cin, K, K), jnp.float32, -bound, bound)
    b = jax.random.uniform(kb, (Cout,), jnp.float32, -bound, bound)

    OH = (H + 2 * P - K) // S + 1
    OW = (W + 2 * P - K) // S + 1

    # f32 compute path: exact semantics vs XLA conv reference.
    out_f32 = conv_embedding(x, w, b, stride=S, padding=P, compute_dtype=jnp.float32)
    out_f32 = jax.block_until_ready(out_f32)
    ref_f32 = jax.lax.conv_general_dilated(
        x, w, window_strides=(S, S), padding=[(P, P), (P, P)],
        dimension_numbers=("NCHW", "OIHW", "NCHW"),
    ) + b.reshape(1, Cout, 1, 1)
    assert out_f32.shape == (N, Cout, OH, OW)
    assert jnp.allclose(out_f32, ref_f32, atol=1e-4, rtol=1e-4)

    # bf16 compute path (recommended on v6e/v7x): compare at matching precision.
    out_bf16 = conv_embedding(x, w, b, stride=S, padding=P, compute_dtype=jnp.bfloat16)
    out_bf16 = jax.block_until_ready(out_bf16)
    ref_bf16 = jax.lax.conv_general_dilated(
        x.astype(jnp.bfloat16), w.astype(jnp.bfloat16),
        window_strides=(S, S), padding=[(P, P), (P, P)],
        dimension_numbers=("NCHW", "OIHW", "NCHW"),
        preferred_element_type=jnp.float32,
    ) + b.reshape(1, Cout, 1, 1)
    assert jnp.allclose(out_bf16, ref_bf16, atol=1e-2, rtol=1e-2)

    # --- Case 2: general path (overlapping stride, padding) ---
    K2, S2, P2 = 3, 2, 1
    kw2, kb2 = jax.random.split(kb)
    fan_in2 = Cin * K2 * K2
    bound2 = 1.0 / (fan_in2 ** 0.5)
    w2 = jax.random.uniform(kw2, (Cout, Cin, K2, K2), jnp.float32, -bound2, bound2)
    b2 = jax.random.uniform(kb2, (Cout,), jnp.float32, -bound2, bound2)

    out2 = conv_embedding(x, w2, b2, stride=S2, padding=P2, compute_dtype=jnp.float32)
    out2 = jax.block_until_ready(out2)
    ref2 = jax.lax.conv_general_dilated(
        x, w2, window_strides=(S2, S2), padding=[(P2, P2), (P2, P2)],
        dimension_numbers=("NCHW", "OIHW", "NCHW"),
    ) + b2.reshape(1, Cout, 1, 1)
    assert jnp.allclose(out2, ref2, atol=1e-4, rtol=1e-4)

    print("KERNEL_OK")
</pallas_src>

<mosaic_0001>
module attributes {stable_mosaic.version = 11 : i64} {
  func.func @_matmul_bias_kernel(%arg0: i32, %arg1: i32, %arg2: memref<16x128xf32, #tpu.memory_space<vmem>>, %arg3: memref<128x128xf32, #tpu.memory_space<vmem>>, %arg4: memref<1x128xf32, #tpu.memory_space<vmem>>, %arg5: memref<16x128xf32, #tpu.memory_space<vmem>>) attributes {dimension_semantics = [#tpu.dimension_semantics<parallel>, #tpu.dimension_semantics<parallel>], iteration_bounds = array<i64: 2, 1>, scalar_prefetch = 0 : i64, scratch_operands = 0 : i64, tpu.core_type = #tpu.core_type<tc>, window_params = [{transform_indices = @transform_0, window_bounds = array<i64: 16, 128>}, {transform_indices = @transform_1, window_bounds = array<i64: 128, 128>}, {transform_indices = @transform_2, window_bounds = array<i64: 1, 128>}, {transform_indices = @transform_3, window_bounds = array<i64: 16, 128>}]} {
    %c0 = arith.constant 0 : index
    %c0_0 = arith.constant 0 : index
    %0 = vector.load %arg2[%c0, %c0_0] : memref<16x128xf32, #tpu.memory_space<vmem>>, vector<16x128xf32>
    %c0_1 = arith.constant 0 : index
    %c0_2 = arith.constant 0 : index
    %1 = vector.load %arg3[%c0_1, %c0_2] : memref<128x128xf32, #tpu.memory_space<vmem>>, vector<128x128xf32>
    %cst = arith.constant dense<0.000000e+00> : vector<16x128xf32>
    %2 = tpu.matmul %0, %1, %cst {dimension_numbers = #tpu.dot_dimension_numbers<[1], [0], [0], [1], [0, 0, 1, 1], [], []>} : vector<16x128xf32>, vector<128x128xf32>, vector<16x128xf32> -> vector<16x128xf32>
    %c0_3 = arith.constant 0 : index
    %c0_4 = arith.constant 0 : index
    %3 = vector.load %arg4[%c0_3, %c0_4] : memref<1x128xf32, #tpu.memory_space<vmem>>, vector<1x128xf32>
    %4 = vector.broadcast %3 : vector<1x128xf32> to vector<16x128xf32>
    %5 = arith.addf %2, %4 : vector<16x128xf32>
    %c0_5 = arith.constant 0 : index
    %c0_6 = arith.constant 0 : index
    %6 = vector.load %arg5[%c0_5, %c0_6] : memref<16x128xf32, #tpu.memory_space<vmem>>, vector<16x128xf32>
    tpu.vector_store %arg5[%c0_5, %c0_6], %5 {strides = array<i32>} : memref<16x128xf32, #tpu.memory_space<vmem>>, vector<16x128xf32>,
    return
  }
  func.func @transform_0(%arg0: i32, %arg1: i32) -> (i32, i32) {
    %c0_i32 = arith.constant 0 : i32
    %c0_i32_0 = arith.constant 0 : i32
    return %arg0, %c0_i32 : i32, i32
  }
  func.func @transform_1(%arg0: i32, %arg1: i32) -> (i32, i32) {
    %c0_i32 = arith.constant 0 : i32
    %c0_i32_0 = arith.constant 0 : i32
    return %c0_i32, %arg1 : i32, i32
  }
  func.func @transform_2(%arg0: i32, %arg1: i32) -> (i32, i32) {
    %c0_i32 = arith.constant 0 : i32
    %c0_i32_0 = arith.constant 0 : i32
    return %c0_i32, %arg1 : i32, i32
  }
  func.func @transform_3(%arg0: i32, %arg1: i32) -> (i32, i32) {
    %c0_i32 = arith.constant 0 : i32
    return %arg0, %arg1 : i32, i32
  }
}

</mosaic_0001>

<bundles_post_ra>
// kernel: tpu_custom_call.1
= control target key start
LH: loop header
LB: loop body
LE: loop exit
PB: predicated region body
PF: predicated region fallthrough
CT: control target
= control target key end

     0   :  { %8 = vsyncpa [#allocation3], 0  ;;  %s981_s0 = inlined_call_operand.hbm [shape: f32[32,128], index: 0, kind: input, shape index: {}]   ;;  %s982_s1 = inlined_call_operand.hbm [shape: f32[128,128], index: 1, kind: input, shape index: {}]   ;;  %s983_s2 = inlined_call_operand.vmem [shape: f32[1,128], index: 2, kind: input, shape index: {}]   ;;  %s984_s3 = inlined_call_operand.hbm [shape: f32[32,128], index: 3, kind: output, shape index: {}]  }
   0x1   :  { %10 = vsyncpa [#allocation3 + $0x1], 0 }
   0x2   :  { %11 = vsyncpa [#allocation6], 0 }
   0x3   :  { %12 = vsyncpa [#allocation4], 0 }
   0x4   :  { %14 = vsyncpa [#allocation4 + $0x1], 0  ;;  %s783_s12 = smov 0   ;;  %s785_s13 = smov 0  }
   0x5   :  { %s787_s14 = smov 0   ;;  %s789_s15 = smov 0  }
   0x6   :  { %s791_s16 = smov 0   ;;  %s793_s17 = smov 0  }
   0x7 LB: > { %s465_s18 = sadd.s32 4294967295, %s754_s17   ;;  %s466_s19 = sadd.s32 4294967294, %s754_s17   ;;  %s754_s17 = sphi %s793_s17, %s20_s17   ;;  %s750_s16 = sphi %s791_s16, %s1006_s16   ;;  %s746_s15 = sphi %s789_s15, %s1005_s15   ;;  %s742_s14 = sphi %s787_s14, %s1004_s14   ;;  %s738_s13 = sphi %s785_s13, %s1003_s13   ;;  %s734_s12 = sphi %s783_s12, %s1002_s12  }
   0x8   : > { %p52_p0 = scmp.ne.s32.totalorder %s738_s13, %s734_s12  ;;  %p817_p1 = scmp.eq.s32.totalorder %s465_s18, 0 }
   0x9   : > { %p821_p2 = scmp.eq.s32.totalorder %s465_s18, 1  ;;  %p136_p3 = scmp.eq.s32.totalorder %s466_s19, 1 }
   0xa   : > { %p827_p4 = por %p817_p1, %p52_p0  ;;  %p467_p5 = scmp.ge.s32.totalorder %s754_s17, 1 }
   0xb   : > { %p832_p6 = por %p136_p3, %p52_p0  ;;  %p143_p7 = scmp.lt.s32.totalorder %s754_s17, 3 }
   0xc   : > { %s990_s22 = scalar_select %p827_p4, 1, 0 }
   0xd   : > { %s991_s23 = scalar_select %p832_p6, 1, 0 }
   0xe   : > { %p837_p8 = pnand %p467_p5, %p143_p7  ;;  %s756_s25 = smov [#allocation5]  }
   0xf   : > { %s157_s26 = sshll.u32 %s756_s25, 4  ;;  %s32_s28 = sadd.s32 1, %s750_s16  ;;  %s158_s26 = int_to_ptr.vmem [resolvable:$true] %s157_s26 }
  0x10   : > { %p547_p9 = pneg %p837_p8  ;;  %s627_s29 = scalar_lea.vmem %s158_s26, 2048 }
  0x11   : > { %p628_p13 = scmp.ne.s32.totalorder %s158_s26, %s627_s29  ;;  %p635_p5 = scmp.lt.s32.totalorder %s158_s26, %s158_s26 }
  0x12   : > { %p846_p11 = pnand %p547_p9, %p817_p1  ;;  %p636_p7 = scmp.lt.s32.totalorder %s627_s29, %s627_s29 }
  0x14   : > { %p618_p12 = pneg %p846_p11  ;;  %p637_p6 = por %p636_p7, %p635_p5 }
  0x16   : > { %p630_p0 = pnand %p628_p13, %p618_p12 }
  0x18   : > { %p631_p3 = pneg %p630_p0 }
  0x1a   : > { %p638_p4 = pnand %p637_p6, %p631_p3 }
  0x1c   : > { %641 = shalt.err (!%p638_p4)
}
  0x1d   : > { %s986_s30 = smov 128   ;;  %s987_s4 = smov 8  }
  0x1e   : > { %550 = dma.hbm_to_vmem [thread:$0]  (!%p846_p11), %s982_s1, 2048, %s158_s26, [#allocation6], %s986_s30, %s986_s30, %s987_s4  }
  0x1f   : > { %p34_p4 = scmp.ge.s32.totalorder %s32_s28, 2  ;;  %s39_s7 = sadd.s32 1, %s742_s14 }
  0x20   : > { %p46_p6 = scmp.ne.s32.totalorder %s742_s14, %s738_s13  ;;  %p47_p9 = scmp.eq.s32.totalorder %s754_s17, 0 }
  0x21   : > { %s1008_s28 = smov (%p34_p4, %s32_s28), 0  ;;  %p560_p0 = scmp.lt.s32.totalorder %s754_s17, 2 }
  0x22   : > { %p867_p12 = por %p47_p9, %p46_p6  ;;  %p873_p13 = por %p821_p2, %p46_p6 }
  0x23   : > { %s36_s10 = ssub.s32 %s750_s16, %s1008_s28  ;;  %s177_s11 = sand.u32 1, %s742_s14  }
  0x24   : > { %p37_p11 = scmp.eq.s32.totalorder %s36_s10, 0  ;;  %s471_s18 = sshll.u32 %s177_s11, 4 }
  0x25   : > { %s484_s25 = sshll.u32 %s750_s16, 8  ;;  %s181_s5 = scalar_lea.vmem [#allocation2], %s471_s18 }
  0x26   : > { %s882_s19 = scalar_select %p37_p11, %s742_s14, %s39_s7  }
  0x27   : > { %s187_s29 = scalar_lea.hbm %s981_s0, %s484_s25  ;;  %s188_s6 = sshll.u32 %s181_s5, 4  ;;  %s189_s6 = int_to_ptr.vmem [resolvable:$true] %s188_s6 }
  0x28   : > { %p890_p2 = pnand %p560_p0, %p867_p12  ;;  %s178_s30 = scalar_lea.sflag [#allocation3], %s177_s11 }
  0x29   : > { %s655_s10 = scalar_lea.vmem %s189_s6, 256  ;;  %s759_s7 = smov [#allocation2]  }
  0x2a   : > { %p644_p3 = pneg %p890_p2  ;;  %p656_p5 = scmp.ne.s32.totalorder %s189_s6, %s655_s10 }
  0x2b   : > { %s660_s4 = sshll.u32 %s759_s7, 4  ;;  %s661_s4 = int_to_ptr.vmem [resolvable:$false] %s660_s4 }
  0x2c   : > { %p658_p7 = pnand %p656_p5, %p644_p3  ;;  %s662_s25 = scalar_lea.vmem %s661_s4, 512 }
  0x2d   : > { %p663_p6 = scmp.lt.s32.totalorder %s189_s6, %s661_s4  ;;  %p664_p9 = scmp.lt.s32.totalorder %s662_s25, %s655_s10 }
  0x2e   : > { %p659_p4 = pneg %p658_p7 }
  0x2f   : > { %p665_p11 = por %p664_p9, %p663_p6 }
  0x31   : > { %p666_p10 = pnand %p665_p11, %p659_p4 }
  0x33   : > { %669 = shalt.err (!%p666_p10)
}
  0x34   : > { %s997_s8 = smov 8   ;;  %s998_s18 = smov 128  }
  0x35   : > { %554 = dma.hbm_to_vmem [thread:$0]  (!%p890_p2), %s187_s29, 256, %s189_s6, %s178_s30, %s998_s18, %s998_s18, %s997_s8  }
  0x36   : > { %200 = sbr.rel (%p837_p8) target bundleno = 306 (0x132), region = 32  ;;  %s904_s11 = sand.u32 (!%p837_p8), 1, %s738_s13  }
  0x37   : > { %s475_s4 = sshll.u32 (!%p837_p8), %s904_s11, 4  ;;  %s203_s26 = scalar_lea.sflag (!%p837_p8), [#allocation3], %s904_s11 }
  0x38   : > { %s910_s27 = scalar_lea.vmem (!%p837_p8), [#allocation2], %s475_s4  ;;  %p999_p10 = scmp.ne.s32.totalorder (!%p837_p8), %s990_s22, 0 }
  0x3b   : > { %721 = dma.done.wait (%p999_p10), %s203_s26, 256  }
  0x3c   : > { %723 = vsyncadd (%p999_p10), %s203_s26, 4294967040 }
  0x3d   : > { %725 = dma.done.wait (%p817_p1), [#allocation6], 2048  }
  0x3e   : > { %727 = vsyncadd (%p817_p1), [#allocation6], 4294965248  ;;  %v258_v0 = vld [vmem:[#allocation5 + $0x78] sm:$0xff]  ;;  %v257_v1 = vld [vmem:[#allocation5 + $0x70] sm:$0xff]  ;;  %s235_s24 = scalar_lea.vmem [#allocation7], %s475_s4  ;;  %s485_s29 = sshll.u32 %s746_s15, 8 }
  0x3f   : > { %504 = vmatprep.subr.mxu0 %v258_v0  ;;  %v256_v2 = vld [vmem:[#allocation5 + $0x68] sm:$0xff]  ;;  %v255_v3 = vld [vmem:[#allocation5 + $0x60] sm:$0xff]  ;;  %v254_v5 = vld [vmem:[#allocation5 + $0x58] sm:$0xff]  ;;  %s358_s30 = sshll.u32 %s235_s24, 4  ;;  %s933_s21 = scalar_lea.hbm %s984_s3, %s485_s29  ;;  %s928_s30 = int_to_ptr.vmem [resolvable:$true] %s358_s30 }
  0x40   : > { %505 = vmatpush3.msra.mxu0 %v258_v0  ;;  %v241_v4 = vld [vmem:[%s910_s27] sm:$0xff]  ;;  %v252_v7 = vld [vmem:[#allocation5 + $0x48] sm:$0xff]  ;;  %v250_v9 = vld [vmem:[#allocation5 + $0x38] sm:$0xff]  ;;  %s344_s10 = scalar_lea.sflag [#allocation4], %s904_s11  ;;  %s670_s7 = scalar_lea.vmem %s928_s30, 256 }
  0x41   : > { %506 = vmatprep.subr.mxu0 %v257_v1  ;;  %536 = vmatprep.mubr.f32.mxu0 %v241_v4  ;;  %v253_v6 = vld [vmem:[#allocation5 + $0x50] sm:$0xff]  ;;  %v251_v8 = vld [vmem:[#allocation5 + $0x40] sm:$0xff]  ;;  %v248_v11 = vld [vmem:[#allocation5 + $0x28] sm:$0xff]  ;;  %p671_p1 = scmp.ne.s32.totalorder %s928_s30, %s670_s7  ;;  %s760_s15 = smov [#allocation7]  }
  0x42   : > { %507 = vmatpush3.msra.mxu0 %v257_v1  ;;  %v249_v10 = vld [vmem:[#allocation5 + $0x30] sm:$0xff]  ;;  %v247_v12 = vld [vmem:[#allocation5 + $0x20] sm:$0xff]  ;;  %v246_v13 = vld [vmem:[#allocation5 + $0x18] sm:$0xff]  ;;  %s674_s25 = sshll.u32 %s760_s15, 4  ;;  %s675_s25 = int_to_ptr.vmem [resolvable:$false] %s674_s25 }
  0x43   : > { %508 = vmatprep.subr.mxu0 %v256_v2  ;;  %v245_v14 = vld [vmem:[#allocation5 + $0x10] sm:$0xff]  ;;  %v244_v15 = vld [vmem:[#allocation5 + $0x8] sm:$0xff]  ;;  %v243_v16 = vld [vmem:[#allocation5] sm:$0xff]  ;;  %p672_p8 = pnand %p671_p1, %p873_p13  ;;  %s676_s8 = scalar_lea.vmem %s675_s25, 512 }
  0x44   : > { %509 = vmatpush3.msra.mxu0 %v256_v2  ;;  %v242_v17 = vld [vmem:[%s910_s27 + $0x8] sm:$0xff]  ;;  %v478_v18 = vld [vmem:[%s983_s2] ss:$0 sm:$0xff]  ;;  %p677_p0 = scmp.lt.s32.totalorder %s928_s30, %s675_s25  ;;  %p678_p2 = scmp.lt.s32.totalorder %s676_s8, %s670_s7 }
  0x45   : > { %510 = vmatprep.subr.mxu0 %v255_v3  ;;  %p673_p12 = pneg %p672_p8 }
  0x46   : > { %511 = vmatpush3.msra.mxu0 %v255_v3  ;;  %p679_p3 = por %p678_p2, %p677_p0 }
  0x47   : > { %512 = vmatprep.subr.mxu0 %v254_v5 }
  0x48   : > { %513 = vmatpush3.msra.mxu0 %v254_v5  ;;  %p680_p5 = pnand %p679_p3, %p673_p12 }
  0x49   : > { %514 = vmatprep.subr.mxu0 %v253_v6 }
  0x4a   : > { %515 = vmatpush3.msra.mxu0 %v253_v6 }
  0x4b   : > { %516 = vmatprep.subr.mxu0 %v252_v7 }
  0x4c   : > { %517 = vmatpush3.msra.mxu0 %v252_v7 }
  0x4d   : > { %518 = vmatprep.subr.mxu0 %v251_v8 }
  0x4e   : > { %519 = vmatpush3.msra.mxu0 %v251_v8 }
  0x4f   : > { %520 = vmatprep.subr.mxu0 %v250_v9 }
  0x50   : > { %521 = vmatpush3.msra.mxu0 %v250_v9 }
  0x51   : > { %522 = vmatprep.subr.mxu0 %v249_v10 }
  0x52   : > { %523 = vmatpush3.msra.mxu0 %v249_v10 }
  0x53   : > { %524 = vmatprep.subr.mxu0 %v248_v11 }
  0x54   : > { %525 = vmatpush3.msra.mxu0 %v248_v11 }
  0x55   : > { %526 = vmatprep.subr.mxu0 %v247_v12 }
  0x56   : > { %527 = vmatpush3.msra.mxu0 %v247_v12 }
  0x57   : > { %528 = vmatprep.subr.mxu0 %v246_v13 }
  0x58   : > { %529 = vmatpush3.msra.mxu0 %v246_v13 }
  0x59   : > { %530 = vmatprep.subr.mxu0 %v245_v14 }
  0x5a   : > { %531 = vmatpush3.msra.mxu0 %v245_v14 }
  0x5b   : > { %532 = vmatprep.subr.mxu0 %v244_v15 }
  0x5c   : > { %533 = vmatpush3.msra.mxu0 %v244_v15 }
  0x5d   : > { %534 = vmatprep.subr.mxu0 %v243_v16 }
  0x5e   : > { %535 = vmatpush3.msra.mxu0 %v243_v16 }
  0x5f   : > { %537 = vmatmul.mubr.f32.vlgmr.msra.gmra.mxu0 %v242_v17 }
 0x11f   : > { %v538_v19 = vpop.f32.mrf.mxu0 }
 0x120   : > { %v338_v20 = vadd.f32 %v538_v19, %v478_v18 }
 0x121   : > { %v332_v21 = vpop.f32.mrf.mxu0 }
 0x122   : > { %342 = vst [vmem:[%s235_s24 + $0x8] sm:$0xff] %v338_v20  ;;  %v333_v22 = vadd.f32 %v478_v18, %v332_v21 }
 0x124   : > { %341 = vst [vmem:[%s235_s24] sm:$0xff] %v333_v22 }
 0x125   : > { %683 = shalt.err (!%p680_p5)
}
 0x126   : > { %s684_s18 = scalar_lea.hbm %s933_s21, 256  ;;  %s688_s27 = scalar_lea.hbm %s984_s3, 512 }
 0x127   : > { %p685_p7 = scmp.ne.s32.totalorder %s933_s21, %s684_s18  ;;  %p689_p9 = scmp.lt.s32.totalorder %s933_s21, %s984_s3 }
 0x128   : > { %p690_p11 = scmp.lt.s32.totalorder %s688_s27, %s684_s18 }
 0x129   : > { %p686_p4 = pnand %p685_p7, %p873_p13 }
 0x12a   : > { %p691_p10 = por %p690_p11, %p689_p9 }
 0x12b   : > { %p687_p6 = pneg %p686_p4 }
 0x12d   : > { %p692_p1 = pnand %p691_p10, %p687_p6 }
 0x12f   : > { %695 = shalt.err (!%p692_p1)
}
 0x130   : > { %s761_s24 = smov 128   ;;  %s762_s29 = smov 8  }
 0x131   : > { %545 = dma.vmem_to_hbm [thread:$0]  (%p873_p13), %s928_s30, 256, %s933_s21, %s344_s10, %s761_s24, %s761_s24, %s762_s29  }
 0x132 PF: > { %s373_s5 = sand.u32 1, %s734_s12   ;;  %p1000_p8 = scmp.ne.s32.totalorder %s991_s23, 0 }
 0x133   : > { %p1001_p12 = scmp.ge.s32.totalorder %s754_s17, 2  ;;  %s374_s6 = scalar_lea.sflag [#allocation4], %s373_s5 }
 0x135   : > { %p556_p0 = pnand %p1001_p12, %p1000_p8 }
 0x137   : > { %p557_p2 = pneg %p556_p0 }
 0x139   : > { %729 = dma.done.wait (%p557_p2), %s374_s6, 256  }
 0x13a   : > { %731 = vsyncadd (%p557_p2), %s374_s6, 4294967040  ;;  %s20_s17 = sadd.s32 1, %s754_s17   ;;  %s1002_s12 = smov %s738_s13 }
 0x13b   : > { %p17_p3 = scmp.ge.s32.totalorder %s20_s17, 4   ;;  %s1003_s13 = smov %s742_s14 }
 0x13c   : > { %s1004_s14 = smov %s882_s19  ;;  %s1005_s15 = smov %s750_s16 }
 0x13d   : > { %s1006_s16 = smov %s1008_s28  ;;  %19 = sbr.rel (!%p17_p3) target bundleno = 7 (0x7), region = 85 }
 0x142   :  { %379 = vsyncpa [#allocation3], 1 }
 0x143   :  { %381 = vsyncpa [#allocation3 + $0x1], 1 }
 0x144   :  { %382 = vsyncpa [#allocation6], 1 }
 0x145   :  { %383 = vsyncpa [#allocation4], 1 }
 0x146   :  { %385 = vsyncpa [#allocation4 + $0x1], 1 }

</bundles_post_ra>
